<compile_context>
chip_gen: v5e
topology: v5e:2x2
jax: 0.10.0
libtpu: 0.0.40
codegen_flags: <defaults>
</compile_context>

<pallas_src>
import jax
import jax.numpy as jnp
from jax.experimental import pallas as pl
from jax.experimental.pallas import tpu as pltpu


# -----------------------------------------------------------------------------
# Pallas kernel: fused MLP trunk + fused dueling heads (one batch tile per step)
# -----------------------------------------------------------------------------
def dueling_dqn_kernel(x_ref, w1_ref, b1_ref, w2_ref, b2_ref, wh_ref, bh_ref, q_ref):
    # x arrives as f32 straight from HBM; cast to bf16 in-register (VPU) for the MXU.
    x = x_ref[...].astype(w1_ref.dtype)                                   # [TB, Din] bf16

    # base_network.fc1 + ReLU  (bf16 x bf16 -> f32 accumulate on the MXU)
    h1 = jnp.dot(x, w1_ref[...], preferred_element_type=jnp.float32)      # [TB, H1] f32
    h1 = jnp.maximum(h1 + b1_ref[...], 0.0)

    # base_network.fc2 + ReLU   (fc3 is nn.Identity -> features = h2)
    h2 = jnp.dot(h1.astype(w2_ref.dtype), w2_ref[...],
                 preferred_element_type=jnp.float32)                       # [TB, H2] f32
    h2 = jnp.maximum(h2 + b2_ref[...], 0.0)

    # fused heads: columns [0] = value, [1:] = advantage
    head = jnp.dot(h2.astype(wh_ref.dtype), wh_ref[...],
                   preferred_element_type=jnp.float32) + bh_ref[...]       # [TB, 1+A] f32
    value = head[:, :1]                                                    # [TB, 1]
    adv = head[:, 1:]                                                      # [TB, A]

    # dueling combine: q = V + A - mean_a(A)
    adv_mean = jnp.mean(adv, axis=1, keepdims=True)                        # [TB, 1]
    q_ref[...] = (value + adv - adv_mean).astype(q_ref.dtype)


# -----------------------------------------------------------------------------
# Tile selection: big tiles to amortize per-step overhead, but >= 4 grid steps
# whenever the batch is large enough (v7x megacore + pipeline overlap).
# -----------------------------------------------------------------------------
def _round_up(n, m):
    return ((n + m - 1) // m) * m


def _cdiv(a, b):
    return (a + b - 1) // b


def _choose_tile_b(b_rows, tile_cap=4096, min_steps=4):
    b8 = _round_up(b_rows, 8)
    steps = max(min_steps, _cdiv(b8, tile_cap))   # enough steps to respect the cap
    steps = max(1, min(steps, b8 // 8))           # but a tile can never shrink below 8 rows
    tile_b = _round_up(_cdiv(b8, steps), 8)
    return min(tile_b, b8)


# -----------------------------------------------------------------------------
# Wrapper: batch-tiled 1-D grid, weights resident, batch axis parallel
# -----------------------------------------------------------------------------
def dueling_dqn_forward(x, params, *, tile_cap=4096, min_steps=4, out_dtype=jnp.float32):
    """x: [B, state_dim] float32.  params: (w1, b1, w2, b2, wh, bh) with weights in
    bf16 [in, out] layout and biases in f32 [1, out] layout; wh/bh are the value and
    advantage heads concatenated along the output dim ([hidden, 1+A] / [1, 1+A])."""
    (w1, b1, w2, b2, wh, bh) = params
    B, state_dim = x.shape
    h1 = w1.shape[1]
    hidden = w2.shape[1]
    n_out = wh.shape[1]            # 1 + n_actions
    n_actions = n_out - 1

    # Only pad when the whole batch is smaller than one sublane group (negligible copy).
    x_in = x
    B_in = B
    if B_in < 8:
        x_in = jnp.pad(x_in, ((0, 8 - B_in), (0, 0)))
        B_in = 8

    TILE_B = _choose_tile_b(B_in, tile_cap, min_steps)
    num_tiles = _cdiv(B_in, TILE_B)     # ragged last block handled by Pallas OOB masking
    grid = (num_tiles,)

    rows_computed = num_tiles * TILE_B
    flops = int(2 * rows_computed * (state_dim * h1 + h1 * hidden + hidden * n_out))
    bytes_accessed = int(
        B_in * state_dim * 4                                    # x streamed as f32
        + sum(int(p.size) * int(p.dtype.itemsize) for p in params)
        + B_in * n_actions * jnp.dtype(out_dtype).itemsize      # q writeback
    )

    resident = lambda i: (0, 0)   # weights/biases: same full-array block every step

    q = pl.pallas_call(
        dueling_dqn_kernel,
        out_shape=jax.ShapeDtypeStruct((B_in, n_actions), out_dtype),
        grid=grid,
        in_specs=[
            pl.BlockSpec((TILE_B, state_dim), lambda i: (i, 0)),   # x tile (pipelined)
            pl.BlockSpec((state_dim, h1), resident),               # w1
            pl.BlockSpec((1, h1), resident),                       # b1
            pl.BlockSpec((h1, hidden), resident),                  # w2
            pl.BlockSpec((1, hidden), resident),                   # b2
            pl.BlockSpec((hidden, n_out), resident),               # fused head W
            pl.BlockSpec((1, n_out), resident),                    # fused head b
        ],
        # n_actions=4 < 128 lanes -> masked partial stores; output is a small fraction
        # of total HBM traffic, so we deliberately don't repack it (see header note).
        out_specs=pl.BlockSpec((TILE_B, n_actions), lambda i: (i, 0)),
        compiler_params=pltpu.CompilerParams(
            dimension_semantics=("parallel",),   # v7x: shard batch tiles over both TCs
        ),
        cost_estimate=pl.CostEstimate(
            flops=flops, transcendentals=0, bytes_accessed=bytes_accessed),
    )(x_in, w1, b1, w2, b2, wh, bh)

    return q[:B]


# -----------------------------------------------------------------------------
# Deterministic parameter init (synthetic; mirrors the PyTorch shapes/inits).
# Weights stored bf16 [in, out]; value/advantage heads pre-concatenated.
# -----------------------------------------------------------------------------
def init_params(key, state_dim, h1, hidden_dim, n_actions=4):
    ks = jax.random.split(key, 4)

    w1 = (jax.random.normal(ks[0], (state_dim, h1), jnp.float32)
          * jnp.sqrt(2.0 / state_dim)).astype(jnp.bfloat16)
    b1 = jnp.zeros((1, h1), jnp.float32)
    w2 = (jax.random.normal(ks[1], (h1, hidden_dim), jnp.float32)
          * jnp.sqrt(2.0 / h1)).astype(jnp.bfloat16)
    b2 = jnp.zeros((1, hidden_dim), jnp.float32)

    # kaiming_normal_(mode='fan_out', relu): std = sqrt(2 / out_features)
    wv = jax.random.normal(ks[2], (hidden_dim, 1), jnp.float32) * jnp.sqrt(2.0 / 1.0)
    wa = jax.random.normal(ks[3], (hidden_dim, n_actions), jnp.float32) * jnp.sqrt(2.0 / n_actions)
    wh = jnp.concatenate([wv, wa], axis=1).astype(jnp.bfloat16)    # [hidden, 1+A]
    bh = jnp.zeros((1, 1 + n_actions), jnp.float32)                # value bias | adv bias

    return (w1, b1, w2, b2, wh, bh)


# -----------------------------------------------------------------------------
# Pure-JAX reference (mirrors the kernel's bf16 feed / f32 accumulate)
# -----------------------------------------------------------------------------
def reference_forward(x, params):
    (w1, b1, w2, b2, wh, bh) = params
    xf = x.astype(jnp.bfloat16).astype(jnp.float32)
    h1 = jnp.maximum(xf @ w1.astype(jnp.float32) + b1, 0.0)
    h1 = h1.astype(jnp.bfloat16).astype(jnp.float32)
    h2 = jnp.maximum(h1 @ w2.astype(jnp.float32) + b2, 0.0)
    h2 = h2.astype(jnp.bfloat16).astype(jnp.float32)
    head = h2 @ wh.astype(jnp.float32) + bh
    value, adv = head[:, :1], head[:, 1:]
    return value + adv - adv.mean(axis=1, keepdims=True)


if __name__ == "__main__":
    key = jax.random.PRNGKey(0)
    k_x1, k_x2, k_p = jax.random.split(key, 3)

    # Small demo shapes; layer widths padded to 128 lanes (MXU-shaped N dims).
    state_dim, h1, hidden_dim, n_actions = 16, 128, 128, 4
    params = init_params(k_p, state_dim, h1, hidden_dim, n_actions=n_actions)

    # Case 1: tiny batch (single tile, B < sublane group).
    x_small = jax.random.normal(k_x1, (2, state_dim), jnp.float32)
    q_small = dueling_dqn_forward(x_small, params)
    jax.block_until_ready(q_small)
    ref_small = reference_forward(x_small, params)
    assert q_small.shape == (2, n_actions)
    assert jnp.allclose(q_small, ref_small, atol=5e-3, rtol=5e-3), (
        f"max abs err {jnp.max(jnp.abs(q_small - ref_small))}")

    # Case 2: multi-step grid with a ragged last block (300 rows -> 4 tiles of 80):
    # exercises resident weights across grid steps and masked OOB output writes.
    x_big = jax.random.normal(k_x2, (300, state_dim), jnp.float32)
    q_big = dueling_dqn_forward(x_big, params)
    jax.block_until_ready(q_big)
    ref_big = reference_forward(x_big, params)
    assert q_big.shape == (300, n_actions)
    assert jnp.allclose(q_big, ref_big, atol=5e-3, rtol=5e-3), (
        f"max abs err {jnp.max(jnp.abs(q_big - ref_big))}")

    print("KERNEL_OK")
</pallas_src>

<mosaic_0001>
module attributes {stable_mosaic.version = 11 : i64} {
  func.func @dueling_dqn_kernel(%arg0: i32, %arg1: memref<8x16xf32, #tpu.memory_space<vmem>>, %arg2: memref<16x128xbf16, #tpu.memory_space<vmem>>, %arg3: memref<1x128xf32, #tpu.memory_space<vmem>>, %arg4: memref<128x128xbf16, #tpu.memory_space<vmem>>, %arg5: memref<1x128xf32, #tpu.memory_space<vmem>>, %arg6: memref<128x5xbf16, #tpu.memory_space<vmem>>, %arg7: memref<1x5xf32, #tpu.memory_space<vmem>>, %arg8: memref<8x4xf32, #tpu.memory_space<vmem>>) attributes {dimension_semantics = [#tpu.dimension_semantics<parallel>], iteration_bounds = array<i64: 1>, scalar_prefetch = 0 : i64, scratch_operands = 0 : i64, tpu.core_type = #tpu.core_type<tc>, window_params = [{transform_indices = @transform_0, window_bounds = array<i64: 8, 16>}, {pipeline_mode = #tpu.pipeline_mode<synchronous>, transform_indices = @transform_1, window_bounds = array<i64: 16, 128>}, {pipeline_mode = #tpu.pipeline_mode<synchronous>, transform_indices = @transform_2, window_bounds = array<i64: 1, 128>}, {pipeline_mode = #tpu.pipeline_mode<synchronous>, transform_indices = @transform_3, window_bounds = array<i64: 128, 128>}, {pipeline_mode = #tpu.pipeline_mode<synchronous>, transform_indices = @transform_4, window_bounds = array<i64: 1, 128>}, {pipeline_mode = #tpu.pipeline_mode<synchronous>, transform_indices = @transform_5, window_bounds = array<i64: 128, 5>}, {pipeline_mode = #tpu.pipeline_mode<synchronous>, transform_indices = @transform_6, window_bounds = array<i64: 1, 5>}, {transform_indices = @transform_7, window_bounds = array<i64: 8, 4>}]} {
    %c0 = arith.constant 0 : index
    %c0_0 = arith.constant 0 : index
    %0 = vector.load %arg1[%c0, %c0_0] : memref<8x16xf32, #tpu.memory_space<vmem>>, vector<8x16xf32>
    %1 = arith.truncf %0 : vector<8x16xf32> to vector<8x16xbf16>
    %c0_1 = arith.constant 0 : index
    %c0_2 = arith.constant 0 : index
    %2 = vector.load %arg2[%c0_1, %c0_2] : memref<16x128xbf16, #tpu.memory_space<vmem>>, vector<16x128xbf16>
    %cst = arith.constant dense<0.000000e+00> : vector<8x128xf32>
    %3 = tpu.matmul %1, %2, %cst {dimension_numbers = #tpu.dot_dimension_numbers<[1], [0], [0], [1], [0, 0, 1, 1], [], []>} : vector<8x16xbf16>, vector<16x128xbf16>, vector<8x128xf32> -> vector<8x128xf32>
    %c0_3 = arith.constant 0 : index
    %c0_4 = arith.constant 0 : index
    %4 = vector.load %arg3[%c0_3, %c0_4] : memref<1x128xf32, #tpu.memory_space<vmem>>, vector<1x128xf32>
    %5 = vector.broadcast %4 : vector<1x128xf32> to vector<8x128xf32>
    %6 = arith.addf %3, %5 : vector<8x128xf32>
    %cst_5 = arith.constant 0.000000e+00 : f32
    %7 = vector.broadcast %cst_5 : f32 to vector<8x128xf32>
    %8 = arith.maximumf %6, %7 : vector<8x128xf32>
    %9 = arith.truncf %8 : vector<8x128xf32> to vector<8x128xbf16>
    %c0_6 = arith.constant 0 : index
    %c0_7 = arith.constant 0 : index
    %10 = vector.load %arg4[%c0_6, %c0_7] : memref<128x128xbf16, #tpu.memory_space<vmem>>, vector<128x128xbf16>
    %cst_8 = arith.constant dense<0.000000e+00> : vector<8x128xf32>
    %11 = tpu.matmul %9, %10, %cst_8 {dimension_numbers = #tpu.dot_dimension_numbers<[1], [0], [0], [1], [0, 0, 1, 1], [], []>} : vector<8x128xbf16>, vector<128x128xbf16>, vector<8x128xf32> -> vector<8x128xf32>
    %c0_9 = arith.constant 0 : index
    %c0_10 = arith.constant 0 : index
    %12 = vector.load %arg5[%c0_9, %c0_10] : memref<1x128xf32, #tpu.memory_space<vmem>>, vector<1x128xf32>
    %13 = vector.broadcast %12 : vector<1x128xf32> to vector<8x128xf32>
    %14 = arith.addf %11, %13 : vector<8x128xf32>
    %cst_11 = arith.constant 0.000000e+00 : f32
    %15 = vector.broadcast %cst_11 : f32 to vector<8x128xf32>
    %16 = arith.maximumf %14, %15 : vector<8x128xf32>
    %17 = arith.truncf %16 : vector<8x128xf32> to vector<8x128xbf16>
    %c0_12 = arith.constant 0 : index
    %c0_13 = arith.constant 0 : index
    %18 = vector.load %arg6[%c0_12, %c0_13] : memref<128x5xbf16, #tpu.memory_space<vmem>>, vector<128x5xbf16>
    %cst_14 = arith.constant dense<0.000000e+00> : vector<8x5xf32>
    %19 = tpu.matmul %17, %18, %cst_14 {dimension_numbers = #tpu.dot_dimension_numbers<[1], [0], [0], [1], [0, 0, 1, 1], [], []>} : vector<8x128xbf16>, vector<128x5xbf16>, vector<8x5xf32> -> vector<8x5xf32>
    %c0_15 = arith.constant 0 : index
    %c0_16 = arith.constant 0 : index
    %20 = vector.load %arg7[%c0_15, %c0_16] : memref<1x5xf32, #tpu.memory_space<vmem>>, vector<1x5xf32>
    %21 = vector.broadcast %20 : vector<1x5xf32> to vector<8x5xf32>
    %22 = arith.addf %19, %21 : vector<8x5xf32>
    %23 = vector.extract_strided_slice %22 {offsets = [0, 0], sizes = [8, 1], strides = [1, 1]} : vector<8x5xf32> to vector<8x1xf32>
    %24 = vector.extract_strided_slice %22 {offsets = [0, 1], sizes = [8, 4], strides = [1, 1]} : vector<8x5xf32> to vector<8x4xf32>
    %cst_17 = arith.constant dense<0.000000e+00> : vector<8xf32>
    %25 = vector.multi_reduction <add>, %24, %cst_17 [1] : vector<8x4xf32> to vector<8xf32>
    %26 = vector.shape_cast %25 : vector<8xf32> to vector<8x1xf32>
    %cst_18 = arith.constant 4.000000e+00 : f32
    %27 = vector.broadcast %cst_18 : f32 to vector<8x1xf32>
    %28 = arith.divf %26, %27 : vector<8x1xf32>
    %29 = vector.broadcast %23 : vector<8x1xf32> to vector<8x4xf32>
    %30 = arith.addf %29, %24 : vector<8x4xf32>
    %31 = vector.broadcast %28 : vector<8x1xf32> to vector<8x4xf32>
    %32 = arith.subf %30, %31 : vector<8x4xf32>
    %c0_19 = arith.constant 0 : index
    %c0_20 = arith.constant 0 : index
    %33 = vector.load %arg8[%c0_19, %c0_20] : memref<8x4xf32, #tpu.memory_space<vmem>>, vector<8x4xf32>
    tpu.vector_store %arg8[%c0_19, %c0_20], %32 {strides = array<i32>} : memref<8x4xf32, #tpu.memory_space<vmem>>, vector<8x4xf32>,
    return
  }
  func.func @transform_0(%arg0: i32) -> (i32, i32) {
    %c0_i32 = arith.constant 0 : i32
    %c0_i32_0 = arith.constant 0 : i32
    return %arg0, %c0_i32 : i32, i32
  }
  func.func @transform_1(%arg0: i32) -> (i32, i32) {
    %c0_i32 = arith.constant 0 : i32
    %c0_i32_0 = arith.constant 0 : i32
    %c0_i32_1 = arith.constant 0 : i32
    return %c0_i32, %c0_i32_0 : i32, i32
  }
  func.func @transform_2(%arg0: i32) -> (i32, i32) {
    %c0_i32 = arith.constant 0 : i32
    %c0_i32_0 = arith.constant 0 : i32
    %c0_i32_1 = arith.constant 0 : i32
    return %c0_i32, %c0_i32_0 : i32, i32
  }
  func.func @transform_3(%arg0: i32) -> (i32, i32) {
    %c0_i32 = arith.constant 0 : i32
    %c0_i32_0 = arith.constant 0 : i32
    %c0_i32_1 = arith.constant 0 : i32
    return %c0_i32, %c0_i32_0 : i32, i32
  }
  func.func @transform_4(%arg0: i32) -> (i32, i32) {
    %c0_i32 = arith.constant 0 : i32
    %c0_i32_0 = arith.constant 0 : i32
    %c0_i32_1 = arith.constant 0 : i32
    return %c0_i32, %c0_i32_0 : i32, i32
  }
  func.func @transform_5(%arg0: i32) -> (i32, i32) {
    %c0_i32 = arith.constant 0 : i32
    %c0_i32_0 = arith.constant 0 : i32
    %c0_i32_1 = arith.constant 0 : i32
    return %c0_i32, %c0_i32_0 : i32, i32
  }
  func.func @transform_6(%arg0: i32) -> (i32, i32) {
    %c0_i32 = arith.constant 0 : i32
    %c0_i32_0 = arith.constant 0 : i32
    %c0_i32_1 = arith.constant 0 : i32
    return %c0_i32, %c0_i32_0 : i32, i32
  }
  func.func @transform_7(%arg0: i32) -> (i32, i32) {
    %c0_i32 = arith.constant 0 : i32
    %c0_i32_0 = arith.constant 0 : i32
    return %arg0, %c0_i32 : i32, i32
  }
}

</mosaic_0001>

<bundles_post_ra>
// kernel: tpu_custom_call.1
= control target key start
LH: loop header
LB: loop body
LE: loop exit
PB: predicated region body
PF: predicated region fallthrough
CT: control target
= control target key end

     0   :  { %12 = vsyncpa [#allocation3], 0  ;;  %s554_s0 = inlined_call_operand.hbm [shape: f32[8,16], index: 0, kind: input, shape index: {}]   ;;  %s555_s1 = inlined_call_operand.hbm [shape: bf16[16,128], index: 1, kind: input, shape index: {}]   ;;  %s556_s2 = inlined_call_operand.vmem [shape: f32[1,128], index: 2, kind: input, shape index: {}]   ;;  %s557_s3 = inlined_call_operand.vmem [shape: bf16[128,128], index: 3, kind: input, shape index: {}]   ;;  %s558_s4 = inlined_call_operand.vmem [shape: f32[1,128], index: 4, kind: input, shape index: {}]   ;;  %s559_s5 = inlined_call_operand.vmem [shape: bf16[128,5], index: 5, kind: input, shape index: {}]   ;;  %s560_s6 = inlined_call_operand.vmem [shape: f32[1,5], index: 6, kind: input, shape index: {}]   ;;  %s561_s7 = inlined_call_operand.vmem [shape: f32[8,4], index: 7, kind: output, shape index: {}]  }
   0x1   :  { %s19_s26 = sshll.u32 %s554_s0, 4  ;;  %s20_s26 = int_to_ptr.hbm [resolvable:$true] %s19_s26 }
   0x2   :  { %13 = vsyncpa [#allocation5], 0  ;;  %s439_s27 = smov [#allocation2]   ;;  %s29_s8 = sshll.u32 %s555_s1, 4  ;;  %s30_s8 = int_to_ptr.hbm [resolvable:$true] %s29_s8 }
   0x3   :  { %s21_s28 = sshll.u32 %s439_s27, 4  ;;  %s440_s9 = smov [#allocation4]   ;;  %s22_s28 = int_to_ptr.vmem [resolvable:$true] %s21_s28 }
   0x4   :  { %24 = dma.hbm_to_vmem [thread:$0]  %s20_s26, 128, %s22_s28, [#allocation3]  }
   0x5   :  { %s31_s10 = sshll.u32 %s440_s9, 4  ;;  %s441_s11 = smov 64   ;;  %s32_s10 = int_to_ptr.vmem [resolvable:$true] %s31_s10 }
   0x6   :  { %s442_s12 = smov 4  }
   0x7   :  { %37 = dma.hbm_to_vmem [thread:$0]  %s30_s8, 128, %s32_s10, [#allocation5], %s441_s11, %s441_s11, %s442_s12  }
   0x8   :  { %435 = dma.done.wait [#allocation3], 128  }
   0x9   :  { %436 = vsyncadd [#allocation3], 4294967168 }
   0xa   :  { %437 = dma.done.wait [#allocation5], 128  }
   0xb   :  { %438 = vsyncadd [#allocation5], 4294967168  ;;  %v356_v0 = vld [vmem:[#allocation4] sm:$0xff]  ;;  %v57_v1 = vld [vmem:[#allocation2] sm:$0xff]  ;;  %vm71_vm0 = vcmask 130048   ;;  %v443_v31 = vmov 0  }
   0xc   :  { %v364_v2 = vld [vmem:[%s557_s3 + $0x38] sm:$0xff]  ;;  %v58_v3 = vpack.c.bf16 %v57_v1, %v57_v1  ;;  %82 = vmatpush.bf16.msra.mxu0 %v356_v0  ;;  %v363_v4 = vld [vmem:[%s557_s3 + $0x30] sm:$0xff]  ;;  %v362_v5 = vld [vmem:[%s557_s3 + $0x28] sm:$0xff]  ;;  %380 = vset.pattern.permute.xlu1 %v443_v31  ;;  %vm258_vm1 = vcmask 31744   ;;  %v445_v38 = vmov 4.0  }
   0xd   :  { %158 = vmatpush.bf16.msra.mxu1 %v364_v2  ;;  %v361_v6 = vld [vmem:[%s557_s3 + $0x20] sm:$0xff]  ;;  %v360_v7 = vld [vmem:[%s557_s3 + $0x18] sm:$0xff]  ;;  %v359_v8 = vld [vmem:[%s557_s3 + $0x10] sm:$0xff]  ;;  %381 = vset.pattern.permute.xlu0 %v443_v31  ;;  %385 = vrcp.f32 %v445_v38 }
   0xe   :  { %v358_v9 = vld [vmem:[%s557_s3 + $0x8] sm:$0xff]  ;;  %v357_v10 = vld [vmem:[%s557_s3] sm:$0xff]  ;;  %v372_v11 = vld [vmem:[%s559_s5 + $0x38] sm:$0xff] }
   0xf   :  { %291 = vmatmul.msk.bf16.vlgmr.msra.gmra.mxu0 %vm71_vm0, %v58_v3  ;;  %241 = vmatpush.bf16.msra.mxu2 %v372_v11  ;;  %v371_v12 = vld [vmem:[%s559_s5 + $0x30] sm:$0xff]  ;;  %v370_v13 = vld [vmem:[%s559_s5 + $0x28] sm:$0xff]  ;;  %v369_v14 = vld [vmem:[%s559_s5 + $0x20] sm:$0xff] }
  0x10   :  { %v368_v15 = vld [vmem:[%s559_s5 + $0x18] sm:$0xff]  ;;  %v367_v16 = vld [vmem:[%s559_s5 + $0x10] sm:$0xff]  ;;  %v382_v17 = vld [vmem:[%s556_s2] ss:$0 sm:$0xff] }
  0x11   :  { %159 = vmatpush.bf16.msra.mxu1 %v363_v4  ;;  %v366_v23 = vld [vmem:[%s559_s5 + $0x8] sm:$0xff]  ;;  %v365_v24 = vld [vmem:[%s559_s5] sm:$0xff]  ;;  %s444_s5 = smov 127  }
  0x12   :  { %v383_v25 = vld [vmem:[%s558_s4] ss:$0 sm:$0xff] }
  0x13   :  { %242 = vmatpush.bf16.msra.mxu2 %v371_v12  ;;  %v384_v32 = vld [vmem:[%s560_s6] ss:$0 sm:$0xff]  ;;  %v386_v39 = vpop.eup %385 }
  0x14   :  { %v263_v40 = vmul.f32 4.0, %v386_v39  ;;  %vm267_vm2 = vweird.f32 %v386_v39 }
  0x15   :  { %160 = vmatpush.bf16.msra.mxu1 %v362_v5 }
  0x16   :  { %v264_v41 = vsub.f32 1.0, %v263_v40 }
  0x17   :  { %243 = vmatpush.bf16.msra.mxu2 %v370_v13 }
  0x18   :  { %v265_v42 = vmul.f32 %v386_v39, %v264_v41 }
  0x19   :  { %161 = vmatpush.bf16.msra.mxu1 %v361_v6 }
  0x1a   :  { %v266_v43 = vadd.f32 %v386_v39, %v265_v42 }
  0x1b   :  { %244 = vmatpush.bf16.msra.mxu2 %v369_v14 }
  0x1c   :  { %v268_v45 = vsel %vm267_vm2, %v386_v39, %v266_v43 }
  0x1d   :  { %162 = vmatpush.bf16.msra.mxu1 %v360_v7 }
  0x1f   :  { %245 = vmatpush.bf16.msra.mxu2 %v368_v15 }
  0x21   :  { %163 = vmatpush.bf16.msra.mxu1 %v359_v8 }
  0x23   :  { %246 = vmatpush.bf16.msra.mxu2 %v367_v16 }
  0x25   :  { %164 = vmatpush.bf16.msra.mxu1 %v358_v9 }
  0x27   :  { %247 = vmatpush.bf16.msra.mxu2 %v366_v23 }
  0x29   :  { %165 = vmatpush.bf16.msra.mxu1 %v357_v10 }
  0x2b   :  { %248 = vmatpush.bf16.msra.mxu2 %v365_v24 }
  0x8c   :  { %v84_v18 = vpop.f32.mrf.mxu0 }
  0x8d   :  { %v85_v19 = vadd.f32 %v382_v17, %v84_v18 }
  0x8f   :  { %v88_v20 = vmax.f32 %v85_v19, 0.0 }
  0x91   :  { %v89_v21 = vpack.c.bf16 %v88_v20, %v88_v20 }
  0x93   :  { %166 = vmatmul.bf16.vlgmr.msra.gmra.mxu1 %v89_v21 }
  0x94   :  { %v86_v22 = vpop.f32.mrf.mxu0 }
 0x110   :  { %v167_v26 = vpop.f32.mrf.mxu1 }
 0x111   :  { %v168_v27 = vadd.f32 %v383_v25, %v167_v26 }
 0x113   :  { %v171_v28 = vmax.f32 %v168_v27, 0.0 }
 0x115   :  { %v172_v29 = vpack.c.bf16 %v171_v28, %v171_v28 }
 0x117   :  { %249 = vmatmul.bf16.vlgmr.msra.gmra.mxu2 %v172_v29 }
 0x118   :  { %v169_v30 = vpop.f32.mrf.mxu1 }
 0x19a   :  { %v250_v33 = vpop.f32.mrf.mxu2 }
 0x19b   :  { %v251_v34 = vadd.f32 %v384_v32, %v250_v33 }
 0x19d   :  { %271 = vperm.xlu1 %380, %v251_v34   ;;  %255 = vrot.lane.b32.xlu0 %v251_v34, %s444_s5 }
 0x1a2   :  { %v252_v35 = vpop.f32.mrf.mxu2 }
 0x20f   :  { %v256_v36 = vpop.permute.xlu0 %255  ;;  %v272_v44 = vpop.permute.xlu1 %271 }
 0x210   :  { %v259_v37 = vsel %vm258_vm1, %v256_v36, 0.0  ;;  %v274_v47 = vadd.f32 %v272_v44, %v251_v34 }
 0x211   :  { %260 = vadd.xlane.f32.xlu0 %v259_v37 }
 0x284   :  { %v261_v46 = vpop.xlane.xlu0 %260 }
 0x285   :  { %v269_v48 = vmul.f32 %v268_v45, %v261_v46 }
 0x287   :  { %v275_v49 = vsub.f32 %v274_v47, %v269_v48 }
 0x289   :  { %277 = vrot.lane.b32.xlu1 %v275_v49, %s444_s5 }
 0x2fb   :  { %v278_v50 = vpop.permute.xlu1 %277 }
 0x2fc   :  { %280 = vst.msk [vmem:[%s561_s7] sm:$0xff] %vm258_vm1, %v278_v50 }
 0x2fd   :  { %285 = vsyncpa [#allocation3], 1 }
 0x2fe   :  { %286 = vsyncpa [#allocation5], 1 }

</bundles_post_ra>
